<compile_context>
chip_gen: v7x
topology: tpu7x:2x2x1
jax: 0.10.0
libtpu: 0.0.40
codegen_flags: <defaults>
</compile_context>

<pallas_src>
import math

import jax
import jax.numpy as jnp
from jax.experimental import pallas as pl
from jax.experimental.pallas import tpu as pltpu

# ~1 MiB of f32 per input per grid step (fused kernel: 3 inputs x 2 buffers
# ~ 6-8 MiB of VMEM).  Could be pushed to 2-4 MiB on v6e for a few extra %,
# but 1 MiB already sits on the roofline plateau and fits every generation.
_TARGET_BLOCK_ELEMS = 256 * 1024
_VMEM_LIMIT_BYTES = 32 * 1024 * 1024      # <= physical VMEM on all generations
_SMALL_LIK_ELEMS = 1 << 15                # below this, XLA's fused reduce wins


def _cdiv(a, b):
    return (a + b - 1) // b


# ----------------------------------------------------------------------------
# Tiling
# ----------------------------------------------------------------------------
def _tiling(S, D):
    """Pick the s-tile so one (tile_s, D) input block is ~_TARGET_BLOCK_ELEMS."""
    target_rows = max(8, _TARGET_BLOCK_ELEMS // max(D, 1))
    if S <= target_rows:
        return S, 1                      # single whole-S tile (always legal)
    tile_s = (target_rows // 8) * 8      # multiple of 8 -> (8,128) rule is met
    return tile_s, _cdiv(S, tile_s)


def _fold(c):
    """Reduce (rows, d) -> (min(rows, 8), d) using sublane-aligned VPU adds only
    (no cross-lane XLU reduce inside the hot loop)."""
    rows, d = c.shape
    if rows <= 8:
        return c
    main = (rows // 8) * 8
    acc = c[:main].reshape(main // 8, 8, d).sum(axis=0)
    rem = rows - main
    if rem:  # only happens for a single whole-S tile with S % 8 != 0
        tail = jnp.concatenate(
            [c[main:, :], jnp.zeros((8 - rem, d), c.dtype)], axis=0)
        acc = acc + tail
    return acc


# ----------------------------------------------------------------------------
# Kernel factories (static tiling params baked in via closure)
# ----------------------------------------------------------------------------
def _make_fused_kernel(S, D, tile_s, num_s_tiles):
    ragged = (S % tile_s) != 0
    last = num_s_tiles - 1
    valid_last = S - last * tile_s

    def kernel(x_ref, y_ref, p_ref, sse_out, log_out):
        j = pl.program_id(1)

        @pl.when(j == 0)
        def _init():
            sse_out[...] = jnp.zeros_like(sse_out)
            log_out[...] = jnp.zeros_like(log_out)

        d = x_ref[...].astype(jnp.float32) - y_ref[...].astype(jnp.float32)
        dd = d * d
        lg = jnp.log(p_ref[...].astype(jnp.float32))

        if not ragged:
            sse_out[...] += _fold(dd)
            log_out[...] += _fold(lg)
        else:
            @pl.when(j != last)                 # interior fast path: no masks
            def _interior():
                sse_out[...] += _fold(dd)
                log_out[...] += _fold(lg)

            @pl.when(j == last)                 # single ragged tail tile
            def _tail():
                m = jax.lax.broadcasted_iota(
                    jnp.int32, (tile_s, D), 0) < valid_last
                # Keep this a select (NOT multiply-by-mask): log of garbage
                # tail rows may be NaN/Inf and must not leak into the sum.
                sse_out[...] += _fold(jnp.where(m, dd, 0.0))
                log_out[...] += _fold(jnp.where(m, lg, 0.0))

    return kernel


def _make_sse_kernel(S, D, tile_s, num_s_tiles):
    ragged = (S % tile_s) != 0
    last = num_s_tiles - 1
    valid_last = S - last * tile_s

    def kernel(x_ref, y_ref, sse_out):
        j = pl.program_id(1)

        @pl.when(j == 0)
        def _init():
            sse_out[...] = jnp.zeros_like(sse_out)

        d = x_ref[...].astype(jnp.float32) - y_ref[...].astype(jnp.float32)
        dd = d * d

        if not ragged:
            sse_out[...] += _fold(dd)
        else:
            @pl.when(j != last)
            def _interior():
                sse_out[...] += _fold(dd)

            @pl.when(j == last)
            def _tail():
                m = jax.lax.broadcasted_iota(
                    jnp.int32, (tile_s, D), 0) < valid_last
                sse_out[...] += _fold(jnp.where(m, dd, 0.0))

    return kernel


def _make_log_kernel(S, D, tile_s, num_s_tiles):
    ragged = (S % tile_s) != 0
    last = num_s_tiles - 1
    valid_last = S - last * tile_s

    def kernel(p_ref, log_out):
        j = pl.program_id(1)

        @pl.when(j == 0)
        def _init():
            log_out[...] = jnp.zeros_like(log_out)

        lg = jnp.log(p_ref[...].astype(jnp.float32))

        if not ragged:
            log_out[...] += _fold(lg)
        else:
            @pl.when(j != last)
            def _interior():
                log_out[...] += _fold(lg)

            @pl.when(j == last)
            def _tail():
                m = jax.lax.broadcasted_iota(
                    jnp.int32, (tile_s, D), 0) < valid_last
                log_out[...] += _fold(jnp.where(m, lg, 0.0))

    return kernel


# ----------------------------------------------------------------------------
# Generic driver
# ----------------------------------------------------------------------------
def _run(kernel, arrays, n_out, tile_s, num_s_tiles):
    B, S, D = arrays[0].shape
    out_rows = min(tile_s, 8)

    in_spec = pl.BlockSpec((None, tile_s, D), lambda b, j: (b, j, 0))
    out_spec = pl.BlockSpec((None, out_rows, D), lambda b, j: (b, 0, 0))

    outs = pl.pallas_call(
        kernel,
        out_shape=tuple(
            jax.ShapeDtypeStruct((B, out_rows, D), jnp.float32)
            for _ in range(n_out)
        ),
        grid_spec=pltpu.PrefetchScalarGridSpec(
            num_scalar_prefetch=0,
            grid=(B, num_s_tiles),
            in_specs=[in_spec for _ in arrays],
            out_specs=[out_spec for _ in range(n_out)],
        ),
        compiler_params=pltpu.CompilerParams(
            dimension_semantics=("parallel", "arbitrary"),
            vmem_limit_bytes=_VMEM_LIMIT_BYTES,
        ),
    )(*arrays)
    # tiny (B, <=8, D) per-batch partials -> scalars in JAX (negligible)
    return tuple(jnp.sum(o, dtype=jnp.float32) for o in outs)


def _fused_sse_logsum(x, x_hat, lik):
    _, S, D = x.shape
    tile_s, nt = _tiling(S, D)
    kernel = _make_fused_kernel(S, D, tile_s, nt)
    sse, logsum = _run(kernel, (x, x_hat, lik), 2, tile_s, nt)
    return sse, logsum


def _sse_reduce(x, x_hat):
    _, S, D = x.shape
    tile_s, nt = _tiling(S, D)
    kernel = _make_sse_kernel(S, D, tile_s, nt)
    (sse,) = _run(kernel, (x, x_hat), 1, tile_s, nt)
    return sse


def _logsum_reduce(p):
    if p.size <= _SMALL_LIK_ELEMS:
        # Kernel launch + pipeline prologue dominates for tiny tensors.
        return jnp.sum(jnp.log(p.astype(jnp.float32)))
    if p.ndim == 1:
        p = p[None, None, :]
    elif p.ndim == 2:
        p = p[None]
    elif p.ndim > 3:
        p = p.reshape((-1,) + p.shape[-2:])   # merge leading dims: layout-free
    _, S, D = p.shape
    tile_s, nt = _tiling(S, D)
    kernel = _make_log_kernel(S, D, tile_s, nt)
    (ls,) = _run(kernel, (p,), 1, tile_s, nt)
    return ls


# ----------------------------------------------------------------------------
# Public API: mirrors RateDistortionLoss.forward(output)
# ----------------------------------------------------------------------------
def rate_distortion_loss(output, lmbda=0.01):
    x = output["x"]
    x_hat = output["x_hat"]
    b, s, d = x.shape
    num_pixels = s * d  # matches the source module exactly (batch excluded)

    liks = list(output["likelihoods"].values())
    if len(liks) == 1 and liks[0].shape == x.shape:
        # Common case: one likelihoods tensor with x's shape -> a single fused
        # kernel launch, one streaming pass over HBM.
        sse, logsum_total = _fused_sse_logsum(x, x_hat, liks[0])
    else:
        sse = _sse_reduce(x, x_hat)
        logsum_total = jnp.float32(0.0)
        for lik in liks:
            logsum_total = logsum_total + _logsum_reduce(lik)

    mse_loss = sse / jnp.float32(b * s * d)     # nn.MSELoss() default: 'mean'
    bpp_loss = logsum_total / jnp.float32(-math.log(2) * num_pixels)

    out = {}
    out["mse_loss"] = mse_loss
    out["bpp_loss"] = bpp_loss
    out["loss"] = lmbda * mse_loss + bpp_loss
    return out


# ----------------------------------------------------------------------------
# Self-test
# ----------------------------------------------------------------------------
def _reference(output, lmbda):
    x = output["x"].astype(jnp.float32)
    x_hat = output["x_hat"].astype(jnp.float32)
    b, s, d = x.shape
    mse = jnp.mean((x - x_hat) ** 2)
    bpp = jnp.float32(0.0)
    for l in output["likelihoods"].values():
        bpp = bpp + jnp.sum(jnp.log(l.astype(jnp.float32))) / (-math.log(2) * s * d)
    return {"mse_loss": mse, "bpp_loss": bpp, "loss": lmbda * mse + bpp}


if __name__ == "__main__":
    key = jax.random.PRNGKey(0)

    def check(output, lmbda=0.01):
        res = rate_distortion_loss(output, lmbda=lmbda)
        res = jax.tree_util.tree_map(jax.block_until_ready, res)
        ref = _reference(output, lmbda)
        for k in ("mse_loss", "bpp_loss", "loss"):
            assert jnp.allclose(res[k], ref[k], rtol=5e-4, atol=1e-5), (
                k, float(res[k]), float(ref[k]))

    def make(key, B, S, D):
        k1, k2, k3 = jax.random.split(key, 3)
        x = jax.random.normal(k1, (B, S, D), dtype=jnp.float32)
        x_hat = x + 0.05 * jax.random.normal(k2, (B, S, D), dtype=jnp.float32)
        lik = jax.random.uniform(k3, (B, S, D), dtype=jnp.float32,
                                 minval=0.05, maxval=1.0)
        return x, x_hat, lik

    # Case 1: small, lane-aligned, single likelihoods tensor -> fused kernel,
    # single whole-S tile, no masking.
    key, k = jax.random.split(key)
    x, x_hat, lik = make(k, 2, 8, 128)
    check({"x": x, "x_hat": x_hat, "likelihoods": {"y": lik}})

    # Case 2: S < 8 (whole-S tile smaller than a sublane group).
    key, k = jax.random.split(key)
    x, x_hat, lik = make(k, 2, 5, 32)
    check({"x": x, "x_hat": x_hat, "likelihoods": {"y": lik}})

    # Case 3: S % 8 != 0, D % 128 != 0 single-tile path (remainder-row fold).
    key, k = jax.random.split(key)
    x, x_hat, lik = make(k, 2, 13, 96)
    check({"x": x, "x_hat": x_hat, "likelihoods": {"y": lik}})

    # Case 4: multi-s-tile fused path with a ragged, masked last tile and a
    # non-lane-aligned minor dim (no wrapper-side relayout).
    key, k = jax.random.split(key)
    x, x_hat, lik = make(k, 2, 4000, 96)
    check({"x": x, "x_hat": x_hat, "likelihoods": {"y": lik}})

    # Case 5: fallback path — two likelihoods tensors of different shapes:
    # the big one goes through the log-sum kernel, the tiny one through XLA.
    key, k1, k2 = jax.random.split(key, 3)
    x, x_hat, lik_y = make(k1, 2, 4000, 96)
    lik_z = jax.random.uniform(k2, (2, 48, 64), dtype=jnp.float32,
                               minval=0.05, maxval=1.0)
    check({"x": x, "x_hat": x_hat, "likelihoods": {"y": lik_y, "z": lik_z}})

    print("KERNEL_OK")
</pallas_src>

<mosaic_0001>
module attributes {stable_mosaic.version = 11 : i64} {
  func.func @kernel(%arg0: i32, %arg1: i32, %arg2: memref<1x8x128xf32, #tpu.memory_space<vmem>>, %arg3: memref<1x8x128xf32, #tpu.memory_space<vmem>>, %arg4: memref<1x8x128xf32, #tpu.memory_space<vmem>>, %arg5: memref<1x8x128xf32, #tpu.memory_space<vmem>>, %arg6: memref<1x8x128xf32, #tpu.memory_space<vmem>>) attributes {dimension_semantics = [#tpu.dimension_semantics<parallel>, #tpu.dimension_semantics<arbitrary>], iteration_bounds = array<i64: 2, 1>, scalar_prefetch = 0 : i64, scratch_operands = 0 : i64, tpu.core_type = #tpu.core_type<tc>, window_params = [{transform_indices = @transform_0, window_bounds = array<i64: 1, 8, 128>}, {transform_indices = @transform_1, window_bounds = array<i64: 1, 8, 128>}, {transform_indices = @transform_2, window_bounds = array<i64: 1, 8, 128>}, {transform_indices = @transform_3, window_bounds = array<i64: 1, 8, 128>}, {transform_indices = @transform_4, window_bounds = array<i64: 1, 8, 128>}]} {
    %c0_i32 = arith.constant 0 : i32
    %0 = arith.cmpi eq, %arg1, %c0_i32 : i32
    %1 = arith.extui %0 : i1 to i32
    %c0_i32_0 = arith.constant 0 : i32
    %2 = arith.cmpi ne, %1, %c0_i32_0 : i32
    scf.if %2 {
      %cst = arith.constant 0.000000e+00 : f32
      %24 = vector.broadcast %cst : f32 to vector<8x128xf32>
      %c0_21 = arith.constant 0 : index
      %c0_22 = arith.constant 0 : index
      %c0_23 = arith.constant 0 : index
      %25 = vector.load %arg5[%c0_21, %c0_22, %c0_23] : memref<1x8x128xf32, #tpu.memory_space<vmem>>, vector<1x8x128xf32>
      %26 = vector.shape_cast %25 : vector<1x8x128xf32> to vector<8x128xf32>
      %27 = vector.shape_cast %24 : vector<8x128xf32> to vector<1x8x128xf32>
      tpu.vector_store %arg5[%c0_21, %c0_22, %c0_23], %27 {strides = array<i32>} : memref<1x8x128xf32, #tpu.memory_space<vmem>>, vector<1x8x128xf32>,
      %cst_24 = arith.constant 0.000000e+00 : f32
      %28 = vector.broadcast %cst_24 : f32 to vector<8x128xf32>
      %c0_25 = arith.constant 0 : index
      %c0_26 = arith.constant 0 : index
      %c0_27 = arith.constant 0 : index
      %29 = vector.load %arg6[%c0_25, %c0_26, %c0_27] : memref<1x8x128xf32, #tpu.memory_space<vmem>>, vector<1x8x128xf32>
      %30 = vector.shape_cast %29 : vector<1x8x128xf32> to vector<8x128xf32>
      %31 = vector.shape_cast %28 : vector<8x128xf32> to vector<1x8x128xf32>
      tpu.vector_store %arg6[%c0_25, %c0_26, %c0_27], %31 {strides = array<i32>} : memref<1x8x128xf32, #tpu.memory_space<vmem>>, vector<1x8x128xf32>,
    } else {
    }
    %c0 = arith.constant 0 : index
    %c0_1 = arith.constant 0 : index
    %c0_2 = arith.constant 0 : index
    %3 = vector.load %arg2[%c0, %c0_1, %c0_2] : memref<1x8x128xf32, #tpu.memory_space<vmem>>, vector<1x8x128xf32>
    %4 = vector.shape_cast %3 : vector<1x8x128xf32> to vector<8x128xf32>
    %c0_3 = arith.constant 0 : index
    %c0_4 = arith.constant 0 : index
    %c0_5 = arith.constant 0 : index
    %5 = vector.load %arg3[%c0_3, %c0_4, %c0_5] : memref<1x8x128xf32, #tpu.memory_space<vmem>>, vector<1x8x128xf32>
    %6 = vector.shape_cast %5 : vector<1x8x128xf32> to vector<8x128xf32>
    %7 = arith.subf %4, %6 : vector<8x128xf32>
    %8 = arith.mulf %7, %7 : vector<8x128xf32>
    %c0_6 = arith.constant 0 : index
    %c0_7 = arith.constant 0 : index
    %c0_8 = arith.constant 0 : index
    %9 = vector.load %arg4[%c0_6, %c0_7, %c0_8] : memref<1x8x128xf32, #tpu.memory_space<vmem>>, vector<1x8x128xf32>
    %10 = vector.shape_cast %9 : vector<1x8x128xf32> to vector<8x128xf32>
    %11 = math.log %10 : vector<8x128xf32>
    %c0_9 = arith.constant 0 : index
    %c0_10 = arith.constant 0 : index
    %c0_11 = arith.constant 0 : index
    %12 = vector.load %arg5[%c0_9, %c0_10, %c0_11] : memref<1x8x128xf32, #tpu.memory_space<vmem>>, vector<1x8x128xf32>
    %13 = vector.shape_cast %12 : vector<1x8x128xf32> to vector<8x128xf32>
    %14 = arith.addf %13, %8 : vector<8x128xf32>
    %c0_12 = arith.constant 0 : index
    %c0_13 = arith.constant 0 : index
    %c0_14 = arith.constant 0 : index
    %15 = vector.load %arg5[%c0_12, %c0_13, %c0_14] : memref<1x8x128xf32, #tpu.memory_space<vmem>>, vector<1x8x128xf32>
    %16 = vector.shape_cast %15 : vector<1x8x128xf32> to vector<8x128xf32>
    %17 = vector.shape_cast %14 : vector<8x128xf32> to vector<1x8x128xf32>
    tpu.vector_store %arg5[%c0_12, %c0_13, %c0_14], %17 {strides = array<i32>} : memref<1x8x128xf32, #tpu.memory_space<vmem>>, vector<1x8x128xf32>,
    %c0_15 = arith.constant 0 : index
    %c0_16 = arith.constant 0 : index
    %c0_17 = arith.constant 0 : index
    %18 = vector.load %arg6[%c0_15, %c0_16, %c0_17] : memref<1x8x128xf32, #tpu.memory_space<vmem>>, vector<1x8x128xf32>
    %19 = vector.shape_cast %18 : vector<1x8x128xf32> to vector<8x128xf32>
    %20 = arith.addf %19, %11 : vector<8x128xf32>
    %c0_18 = arith.constant 0 : index
    %c0_19 = arith.constant 0 : index
    %c0_20 = arith.constant 0 : index
    %21 = vector.load %arg6[%c0_18, %c0_19, %c0_20] : memref<1x8x128xf32, #tpu.memory_space<vmem>>, vector<1x8x128xf32>
    %22 = vector.shape_cast %21 : vector<1x8x128xf32> to vector<8x128xf32>
    %23 = vector.shape_cast %20 : vector<8x128xf32> to vector<1x8x128xf32>
    tpu.vector_store %arg6[%c0_18, %c0_19, %c0_20], %23 {strides = array<i32>} : memref<1x8x128xf32, #tpu.memory_space<vmem>>, vector<1x8x128xf32>,
    return
  }
  func.func @transform_0(%arg0: i32, %arg1: i32) -> (i32, i32, i32) {
    %c0_i32 = arith.constant 0 : i32
    %c0_i32_0 = arith.constant 0 : i32
    return %arg0, %arg1, %c0_i32 : i32, i32, i32
  }
  func.func @transform_1(%arg0: i32, %arg1: i32) -> (i32, i32, i32) {
    %c0_i32 = arith.constant 0 : i32
    %c0_i32_0 = arith.constant 0 : i32
    return %arg0, %arg1, %c0_i32 : i32, i32, i32
  }
  func.func @transform_2(%arg0: i32, %arg1: i32) -> (i32, i32, i32) {
    %c0_i32 = arith.constant 0 : i32
    %c0_i32_0 = arith.constant 0 : i32
    return %arg0, %arg1, %c0_i32 : i32, i32, i32
  }
  func.func @transform_3(%arg0: i32, %arg1: i32) -> (i32, i32, i32) {
    %c0_i32 = arith.constant 0 : i32
    %c0_i32_0 = arith.constant 0 : i32
    %c0_i32_1 = arith.constant 0 : i32
    return %arg0, %c0_i32, %c0_i32_0 : i32, i32, i32
  }
  func.func @transform_4(%arg0: i32, %arg1: i32) -> (i32, i32, i32) {
    %c0_i32 = arith.constant 0 : i32
    %c0_i32_0 = arith.constant 0 : i32
    %c0_i32_1 = arith.constant 0 : i32
    return %arg0, %c0_i32, %c0_i32_0 : i32, i32, i32
  }
}

</mosaic_0001>

<bundles_post_ra>
// kernel: tpu_custom_call.1
= control target key start
LH: loop header
LB: loop body
LE: loop exit
PB: predicated region body
PF: predicated region fallthrough
CT: control target
= control target key end

     0   :  { %s1163_s0 = inlined_call_operand.hbm [shape: f32[2,8,128], index: 0, kind: input, shape index: {}]   ;;  %s1164_s1 = inlined_call_operand.hbm [shape: f32[2,8,128], index: 1, kind: input, shape index: {}]   ;;  %s1165_s2 = inlined_call_operand.hbm [shape: f32[2,8,128], index: 2, kind: input, shape index: {}]   ;;  %s1166_s3 = inlined_call_operand.hbm [shape: f32[2,8,128], index: 3, kind: output, shape index: {0}]   ;;  %s1167_s4 = inlined_call_operand.hbm [shape: f32[2,8,128], index: 4, kind: output, shape index: {1}]  }
   0x1   :  { %1176 = sst [smem:[#allocation19_spill]] %s1164_s1 }
   0x2   :  { %10 = vsyncpa [#allocation3], 0 }
   0x3   :  { %12 = vsyncpa [#allocation3 + $0x1], 0 }
   0x4   :  { %13 = vsyncpa [#allocation6], 0 }
   0x5   :  { %15 = vsyncpa [#allocation6 + $0x1], 0 }
   0x6   :  { %16 = vsyncpa [#allocation4], 0 }
   0x7   :  { %18 = vsyncpa [#allocation4 + $0x1], 0 }
   0x8   :  { %19 = vsyncpa [#allocation10], 0 }
   0x9   :  { %21 = vsyncpa [#allocation10 + $0x1], 0  ;;  %s865_s15 = smov 0   ;;  %s867_s16 = smov 0  }
   0xa   :  { %s869_s17 = smov 0   ;;  %s871_s18 = smov 0  }
   0xb   :  { %s873_s19 = smov 0   ;;  %s875_s20 = smov 0  }
   0xc LB: > { %1177 = sst [smem:[#allocation15_spill]] %s829_s19  ;;  %s896_s21 = sadd.s32 4294967295, %s833_s20   ;;  %s833_s20 = sphi %s875_s20, %s27_s20   ;;  %s829_s19 = sphi %s873_s19, %s1201_s19   ;;  %s825_s18 = sphi %s871_s18, %s1200_s18   ;;  %s821_s17 = sphi %s869_s17, %s1204_s17   ;;  %s817_s16 = sphi %s867_s16, %s1203_s16   ;;  %s813_s15 = sphi %s865_s15, %s1202_s15  }
   0xd   : > { %1178 = sst [smem:[#allocation16_spill]] %s833_s20  ;;  %s524_s22 = sadd.s32 4294967294, %s833_s20  }
   0xe   : > { %s39_s23 = sadd.s32 1, %s829_s19  ;;  %s48_s24 = sadd.s32 1, %s821_s17 }
   0xf   : > { %p41_p0 = scmp.ge.s32.totalorder %s39_s23, 2  ;;  %p55_p1 = scmp.ne.s32.totalorder %s821_s17, %s817_s16 }
  0x10   : > { %p56_p2 = scmp.eq.s32.totalorder %s833_s20, 0  ;;  %p61_p3 = scmp.ne.s32.totalorder %s817_s16, %s813_s15 }
  0x11   : > { %s1206_s23 = smov (%p41_p0, %s39_s23), 0  ;;  %p62_p5 = scmp.eq.s32.totalorder %s896_s21, 0 }
  0x12   : > { %1179 = sst [smem:[#allocation17_spill]] %s1206_s23  ;;  %p908_p4 = por %p56_p2, %p55_p1 }
  0x13   : > { %s43_s26 = ssub.s32 %s829_s19, %s1206_s23  ;;  %p141_p6 = scmp.eq.s32.totalorder %s896_s21, 1 }
  0x14   : > { %p46_p7 = scmp.eq.s32.totalorder %s43_s26, 0  ;;  %p916_p8 = por %p62_p5, %p61_p3 }
  0x15   : > { %p920_p9 = por %p141_p6, %p55_p1  ;;  %p147_p10 = scmp.eq.s32.totalorder %s524_s22, 1 }
  0x16   : > { %s1181_s27 = scalar_select %p916_p8, 1, 0 }
  0x17   : > { %s1182_s28 = scalar_select %p920_p9, 1, 0 }
  0x18   : > { %s925_s29 = scalar_select %p46_p7, %s821_s17, %s48_s24  }
  0x19   : > { %p927_p11 = por %p147_p10, %p61_p3  ;;  %p572_p13 = scmp.lt.s32.totalorder %s833_s20, 2 }
  0x1a   : > { %1183 = sst [smem:[#allocation18_spill]] %s925_s29  ;;  %s1168_s5 = sand.u32 1, %s821_s17  }
  0x1b   : > { %s1184_s30 = scalar_select %p927_p11, 1, 0 }
  0x1c   : > { %s936_s6 = sshll.u32 %s1168_s5, 3  ;;  %s939_s7 = sshll.u32 %s829_s19, 7 }
  0x1d   : > { %p943_p0 = pnand %p572_p13, %p908_p4  ;;  %s212_s9 = sand.u32 1, %s833_s20  }
  0x1e   : > { %s1186_s1 = sld [smem:[#allocation19_spill]]  ;;  %s216_s13 = scalar_lea.vmem [#allocation5], %s936_s6 }
  0x1f   : > { %s1185_s8 = scalar_select %p943_p0, 1, 0 }
  0x20   : > { %s224_s14 = sshll.u32 %s216_s13, 4  ;;  %s959_s22 = scalar_lea.sflag [#allocation6], %s212_s9  ;;  %s956_s14 = int_to_ptr.vmem [resolvable:$true] %s224_s14 }
  0x21   : > { %p965_p4 = pneg %p943_p0 }
  0x24   : > { %s952_s12 = scalar_lea.hbm %s1186_s1, %s939_s7  ;;  %s630_s11 = scalar_lea.hbm %s1186_s1, 256 }
  0x25   : > { %s625_s24 = scalar_lea.hbm %s952_s12, 128  ;;  %p631_p7 = scmp.lt.u32.totalorder %s952_s12, %s1186_s1 }
  0x26   : > { %p626_p3 = scmp.ne.s32.totalorder %s952_s12, %s625_s24  ;;  %p632_p10 = scmp.lt.u32.totalorder %s630_s11, %s625_s24 }
  0x27   : > { %p634_p12 = scmp.lt.u32.totalorder %s625_s24, %s952_s12 }
  0x28   : > { %p628_p5 = pnand %p965_p4, %p626_p3  ;;  %p633_p13 = por %p632_p10, %p631_p7 }
  0x2a   : > { %p629_p6 = pneg %p628_p5  ;;  %p635_p1 = por %p634_p12, %p633_p13 }
  0x2c   : > { %p636_p2 = pnand %p635_p1, %p629_p6 }
  0x2e   : > { %639 = shalt.err (!%p636_p2)
}
  0x2f   : > { %s640_s9 = scalar_lea.vmem %s956_s14, 128  ;;  %s835_s26 = smov [#allocation5]  }
  0x30   : > { %p641_p3 = scmp.ne.s32.totalorder %s956_s14, %s640_s9  ;;  %s645_s10 = sshll.u32 %s835_s26, 4  ;;  %s646_s10 = int_to_ptr.vmem [resolvable:$false] %s645_s10 }
  0x31   : > { %s647_s5 = scalar_lea.vmem %s646_s10, 256  ;;  %p648_p9 = scmp.lt.s32.totalorder %s956_s14, %s646_s10 }
  0x32   : > { %p643_p5 = pnand %p641_p3, %p965_p4  ;;  %p649_p8 = scmp.lt.s32.totalorder %s647_s5, %s640_s9 }
  0x34   : > { %p644_p11 = pneg %p643_p5  ;;  %p650_p7 = por %p649_p8, %p648_p9 }
  0x36   : > { %p651_p10 = pnand %p650_p7, %p644_p11 }
  0x38   : > { %654 = shalt.err (!%p651_p10)
}
  0x39   : > { %561 = dma.hbm_to_vmem [thread:$0]  (!%p943_p0), %s952_s12, 128, %s956_s14, %s959_s22  }
  0x3a   : > { %p1188_p12 = scmp.lt.s32.totalorder %s833_s20, 3  ;;  %p1189_p1 = scmp.ge.s32.totalorder %s833_s20, 1 }
  0x3b   : > { %s1001_s9 = scalar_lea.hbm %s1163_s0, %s939_s7  ;;  %s197_s26 = scalar_lea.vmem [#allocation2], %s936_s6 }
  0x3c   : > { %p993_p2 = pnand %p1189_p1, %p1188_p12  ;;  %s205_s10 = sshll.u32 %s197_s26, 4  ;;  %s1004_s10 = int_to_ptr.vmem [resolvable:$true] %s205_s10 }
  0x3d   : > { %s1010_s5 = scalar_lea.hbm %s1165_s2, %s939_s7  ;;  %s1191_s1 = sand.u32 1, %s821_s17  }
  0x3e   : > { %s1190_s24 = scalar_select %p993_p2, 1, 0 }
  0x3f   : > { %s194_s23 = scalar_lea.sflag [#allocation3], %s1191_s1  ;;  %s655_s19 = scalar_lea.hbm %s1001_s9, 128 }
  0x40   : > { %p656_p8 = scmp.ne.s32.totalorder %s1001_s9, %s655_s19  ;;  %s660_s29 = scalar_lea.hbm %s1163_s0, 256 }
  0x41   : > { %p661_p6 = scmp.lt.u32.totalorder %s1001_s9, %s1163_s0  ;;  %p662_p13 = scmp.lt.u32.totalorder %s660_s29, %s655_s19 }
  0x42   : > { %p658_p9 = pnand %p656_p8, %p965_p4  ;;  %p664_p5 = scmp.lt.u32.totalorder %s655_s19, %s1001_s9 }
  0x43   : > { %p663_p3 = por %p662_p13, %p661_p6 }
  0x44   : > { %p659_p11 = pneg %p658_p9 }
  0x45   : > { %p665_p7 = por %p664_p5, %p663_p3 }
  0x47   : > { %p666_p10 = pnand %p665_p7, %p659_p11 }
  0x49   : > { %669 = shalt.err (!%p666_p10)
}
  0x4a   : > { %s670_s1 = scalar_lea.vmem %s1004_s10, 128  ;;  %s836_s7 = smov [#allocation2]  }
  0x4b   : > { %p671_p12 = scmp.ne.s32.totalorder %s1004_s10, %s670_s1  ;;  %s675_s12 = sshll.u32 %s836_s7, 4  ;;  %s676_s12 = int_to_ptr.vmem [resolvable:$false] %s675_s12 }
  0x4c   : > { %s677_s20 = scalar_lea.vmem %s676_s12, 256  ;;  %p678_p9 = scmp.lt.s32.totalorder %s1004_s10, %s676_s12 }
  0x4d   : > { %p673_p1 = pnand %p671_p12, %p965_p4  ;;  %p679_p2 = scmp.lt.s32.totalorder %s677_s20, %s670_s1 }
  0x4f   : > { %p674_p8 = pneg %p673_p1  ;;  %p680_p6 = por %p679_p2, %p678_p9 }
  0x51   : > { %p681_p13 = pnand %p680_p6, %p674_p8 }
  0x53   : > { %684 = shalt.err (!%p681_p13)
}
  0x54   : > { %558 = dma.hbm_to_vmem [thread:$0]  (!%p943_p0), %s1001_s9, 128, %s1004_s10, %s194_s23  }
  0x55   : > { %s235_s19 = scalar_lea.vmem [#allocation7], %s936_s6  ;;  %s685_s14 = scalar_lea.hbm %s1010_s5, 128 }
  0x56   : > { %s243_s29 = sshll.u32 %s235_s19, 4  ;;  %p686_p11 = scmp.ne.s32.totalorder %s1010_s5, %s685_s14  ;;  %s244_s29 = int_to_ptr.vmem [resolvable:$true] %s243_s29 }
  0x57   : > { %s690_s26 = scalar_lea.hbm %s1165_s2, 256  ;;  %p691_p5 = scmp.lt.u32.totalorder %s1010_s5, %s1165_s2 }
  0x58   : > { %p688_p2 = pnand %p686_p11, %p965_p4  ;;  %p692_p7 = scmp.lt.u32.totalorder %s690_s26, %s685_s14 }
  0x59   : > { %p694_p12 = scmp.lt.u32.totalorder %s685_s14, %s1010_s5 }
  0x5a   : > { %p689_p3 = pneg %p688_p2  ;;  %p693_p10 = por %p692_p7, %p691_p5 }
  0x5c   : > { %p695_p1 = por %p694_p12, %p693_p10 }
  0x5e   : > { %p696_p8 = pnand %p695_p1, %p689_p3 }
  0x60   : > { %699 = shalt.err (!%p696_p8)
}
  0x61   : > { %s700_s23 = scalar_lea.vmem %s244_s29, 128  ;;  %s837_s6 = smov [#allocation7]  }
  0x62   : > { %p701_p9 = scmp.ne.s32.totalorder %s244_s29, %s700_s23  ;;  %s705_s9 = sshll.u32 %s837_s6, 4  ;;  %s706_s9 = int_to_ptr.vmem [resolvable:$false] %s705_s9 }
  0x63   : > { %s707_s10 = scalar_lea.vmem %s706_s9, 256  ;;  %p708_p11 = scmp.lt.s32.totalorder %s244_s29, %s706_s9 }
  0x64   : > { %p703_p6 = pnand %p701_p9, %p965_p4  ;;  %p709_p2 = scmp.lt.s32.totalorder %s707_s10, %s700_s23 }
  0x66   : > { %p704_p13 = pneg %p703_p6  ;;  %p710_p0 = por %p709_p2, %p708_p11 }
  0x68   : > { %p711_p5 = pnand %p710_p0, %p704_p13 }
  0x6a   : > { %714 = shalt.err (!%p711_p5)
}
  0x6b   : > { %p1192_p7 = scmp.ne.s32.totalorder %s1185_s8, 0  ;;  %p1193_p3 = scmp.ne.s32.totalorder %s1190_s24, 0 }
  0x6c   : > { %s1057_s25 = sand.u32 (!%p1193_p3), 1, %s817_s16   ;;  %p1194_p0 = scmp.ne.s32.totalorder (!%p1193_p3), %s1181_s27, 0 }
  0x6d   : > { %564 = dma.hbm_to_vmem [thread:$0]  (!%p1192_p7), %s1010_s5, 128, %s244_s29, %s959_s22  }
  0x6e   : > { %252 = sbr.rel (%p1193_p3) target bundleno = 171 (0xab), region = 32  ;;  %s1060_s12 = sshll.u32 (!%p1193_p3), %s1057_s25, 3 }
  0x6f   : > { %s255_s20 = scalar_lea.sflag (!%p1193_p3), [#allocation3], %s1057_s25  ;;  %s258_s19 = scalar_lea.vmem (!%p1193_p3), [#allocation2], %s1060_s12 }
  0x75   : > { %796 = dma.done.wait (%p1194_p0), %s255_s20, 128  }
  0x76   : > { %798 = vsyncadd (%p1194_p0), %s255_s20, 4294967168  ;;  %s263_s8 = sand.u32 1, %s896_s21   ;;  %s267_s24 = scalar_lea.vmem [#allocation5], %s1060_s12 }
  0x77   : > { %s264_s22 = scalar_lea.sflag [#allocation6], %s263_s8 }
  0x78   : > { %800 = dma.done.wait (%p1194_p0), %s264_s22, 256  }
  0x79   : > { %802 = vsyncadd (%p1194_p0), %s264_s22, 4294967040  ;;  %v322_v0 = vld [vmem:[%s258_s19] sm:$0xff]  ;;  %v323_v1 = vld [vmem:[%s267_s24] sm:$0xff]  ;;  %s276_s5 = scalar_lea.vmem [#allocation7], %s1060_s12  ;;  %s541_s21 = sshll.u32 %s825_s18, 7 }
  0x7a   : > { %v326_v2 = vld [vmem:[%s276_s5] sm:$0xff]  ;;  %v324_v3 = vsub.f32 %v322_v0, %v323_v1  ;;  %s308_s29 = scalar_lea.vmem [#allocation8], %s1060_s12  ;;  %s1082_s13 = scalar_lea.hbm %s1166_s3, %s541_s21 }
  0x7b   : > { %623 = vlog2.f32 %v326_v2  ;;  %s354_s14 = sshll.u32 %s308_s29, 4  ;;  %s336_s26 = scalar_lea.sflag [#allocation4], %s1057_s25  ;;  %s1084_s14 = int_to_ptr.vmem [resolvable:$true] %s354_s14 }
  0x7c   : > { %v325_v4 = vmul.f32 %v324_v3, %v324_v3  ;;  %s715_s1 = scalar_lea.vmem %s1084_s14, 128  ;;  %p1195_p10 = scmp.ne.s32.totalorder %s1182_s28, 0 }
  0x7d   : > { %p716_p4 = scmp.ne.s32.totalorder %s1084_s14, %s715_s1  ;;  %s838_s7 = smov [#allocation8]  }
  0x7e   : > { %331 = vst [vmem:[%s308_s29] sm:$0xff] %v325_v4  ;;  %s719_s23 = sshll.u32 %s838_s7, 4  ;;  %s720_s23 = int_to_ptr.vmem [resolvable:$false] %s719_s23 }
  0x7f   : > { %p717_p12 = pnand %p716_p4, %p1195_p10  ;;  %s721_s6 = scalar_lea.vmem %s720_s23, 256 }
  0x80   : > { %p722_p8 = scmp.lt.s32.totalorder %s1084_s14, %s720_s23  ;;  %p723_p9 = scmp.lt.s32.totalorder %s721_s6, %s715_s1 }
  0x81   : > { %p718_p1 = pneg %p717_p12 }
  0x82   : > { %p724_p6 = por %p723_p9, %p722_p8 }
  0x84   : > { %p725_p13 = pnand %p724_p6, %p718_p1 }
  0x86   : > { %728 = shalt.err (!%p725_p13)
}
  0x87   : > { %s729_s9 = scalar_lea.hbm %s1082_s13, 128  ;;  %s733_s19 = scalar_lea.hbm %s1166_s3, 256 }
  0x88   : > { %p730_p11 = scmp.ne.s32.totalorder %s1082_s13, %s729_s9  ;;  %p734_p7 = scmp.lt.u32.totalorder %s1082_s13, %s1166_s3 }
  0x89   : > { %p735_p3 = scmp.lt.u32.totalorder %s733_s19, %s729_s9  ;;  %p737_p4 = scmp.lt.u32.totalorder %s729_s9, %s1082_s13 }
  0x8a   : > { %p731_p2 = pnand %p730_p11, %p1195_p10 }
  0x8b   : > { %p736_p0 = por %p735_p3, %p734_p7 }
  0x8c   : > { %p732_p5 = pneg %p731_p2 }
  0x8d   : > { %p738_p12 = por %p737_p4, %p736_p0 }
  0x8f   : > { %p739_p1 = pnand %p738_p12, %p732_p5 }
  0x91   : > { %742 = shalt.err (!%p739_p1)
}
  0x92   : > { %551 = dma.vmem_to_hbm [thread:$0]  (%p1195_p10), %s1084_s14, 128, %s1082_s13, %s336_s26   ;;  %v624_v5 = vpop.eup %623 }
  0x93   : > { %s315_s24 = scalar_lea.vmem [#allocation9], %s1060_s12  ;;  %v328_v6 = vmul.f32 0.6931472, %v624_v5  ;;  %s1114_s27 = scalar_lea.hbm %s1167_s4, %s541_s21 }
  0x94   : > { %s367_s5 = sshll.u32 %s315_s24, 4  ;;  %s341_s1 = scalar_lea.sflag [#allocation10], %s1057_s25  ;;  %s1116_s5 = int_to_ptr.vmem [resolvable:$true] %s367_s5 }
  0x95   : > { %334 = vst [vmem:[%s315_s24] sm:$0xff] %v328_v6  ;;  %s743_s7 = scalar_lea.vmem %s1116_s5, 128  ;;  %s839_s12 = smov [#allocation9]  }
  0x96   : > { %p744_p8 = scmp.ne.s32.totalorder %s1116_s5, %s743_s7  ;;  %s747_s14 = sshll.u32 %s839_s12, 4  ;;  %s748_s14 = int_to_ptr.vmem [resolvable:$false] %s747_s14 }
  0x97   : > { %s749_s18 = scalar_lea.vmem %s748_s14, 256  ;;  %p750_p13 = scmp.lt.s32.totalorder %s1116_s5, %s748_s14 }
  0x98   : > { %p745_p9 = pnand %p744_p8, %p1195_p10  ;;  %p751_p11 = scmp.lt.s32.totalorder %s749_s18, %s743_s7 }
  0x9a   : > { %p746_p6 = pneg %p745_p9  ;;  %p752_p2 = por %p751_p11, %p750_p13 }
  0x9c   : > { %p753_p5 = pnand %p752_p2, %p746_p6 }
  0x9e   : > { %756 = shalt.err (!%p753_p5)
}
  0x9f   : > { %s757_s25 = scalar_lea.hbm %s1114_s27, 128  ;;  %s761_s26 = scalar_lea.hbm %s1167_s4, 256 }
  0xa0   : > { %p758_p7 = scmp.ne.s32.totalorder %s1114_s27, %s757_s25  ;;  %p762_p4 = scmp.lt.u32.totalorder %s1114_s27, %s1167_s4 }
  0xa1   : > { %p763_p12 = scmp.lt.u32.totalorder %s761_s26, %s757_s25  ;;  %p765_p8 = scmp.lt.u32.totalorder %s757_s25, %s1114_s27 }
  0xa2   : > { %p759_p3 = pnand %p758_p7, %p1195_p10 }
  0xa3   : > { %p764_p1 = por %p763_p12, %p762_p4 }
  0xa4   : > { %p760_p0 = pneg %p759_p3 }
  0xa5   : > { %p766_p9 = por %p765_p8, %p764_p1 }
  0xa7   : > { %p767_p6 = pnand %p766_p9, %p760_p0 }
  0xa9   : > { %770 = shalt.err (!%p767_p6)
}
  0xaa   : > { %552 = dma.vmem_to_hbm [thread:$0]  (%p1195_p10), %s1116_s5, 128, %s1114_s27, %s341_s1  }
  0xab PF: > { %s1196_s9 = sld [smem:[#allocation16_spill]]  ;;  %s379_s10 = sand.u32 1, %s813_s15  }
  0xac   : > { %p1197_p13 = scmp.ne.s32.totalorder %s1184_s30, 0  ;;  %s380_s20 = scalar_lea.sflag [#allocation4], %s379_s10 }
  0xb1   : > { %p1198_p11 = scmp.ge.s32.totalorder %s1196_s9, 2 }
  0xb3   : > { %p566_p2 = pnand %p1198_p11, %p1197_p13 }
  0xb5   : > { %804 = dma.done.wait (!%p566_p2), %s380_s20, 128  }
  0xb6   : > { %806 = vsyncadd (!%p566_p2), %s380_s20, 4294967168  ;;  %s389_s19 = scalar_lea.sflag [#allocation10], %s379_s10 }
  0xb7   : > { %808 = dma.done.wait (!%p566_p2), %s389_s19, 128  }
  0xb8   : > { %810 = vsyncadd (!%p566_p2), %s389_s19, 4294967168  ;;  %s27_s20 = sadd.s32 1, %s1196_s9   ;;  %s1199_s28 = sld [smem:[#allocation18_spill]] }
  0xb9   : > { %p24_p5 = scmp.ge.s32.totalorder %s27_s20, 4   ;;  %s1200_s18 = sld [smem:[#allocation15_spill]] }
  0xba   : > { %s1201_s19 = sld [smem:[#allocation17_spill]]  ;;  %s1202_s15 = smov %s817_s16 }
  0xbb   : > { %s1203_s16 = smov %s821_s17  ;;  %26 = sbr.rel (!%p24_p5) target bundleno = 12 (0xc), region = 122 }
  0xbe   : > { %s1204_s17 = smov %s1199_s28 }
  0xc2   :  { %394 = vsyncpa [#allocation3], 1 }
  0xc3   :  { %396 = vsyncpa [#allocation3 + $0x1], 1 }
  0xc4   :  { %397 = vsyncpa [#allocation6], 1 }
  0xc5   :  { %399 = vsyncpa [#allocation6 + $0x1], 1 }
  0xc6   :  { %400 = vsyncpa [#allocation4], 1 }
  0xc7   :  { %402 = vsyncpa [#allocation4 + $0x1], 1 }
  0xc8   :  { %403 = vsyncpa [#allocation10], 1 }
  0xc9   :  { %405 = vsyncpa [#allocation10 + $0x1], 1 }

</bundles_post_ra>
